<compile_context>
chip_gen: v7x
topology: tpu7x:2x2x1
jax: 0.10.0
libtpu: 0.0.40
codegen_flags: <defaults>
</compile_context>

<pallas_src>
import math

import jax
import jax.numpy as jnp
from jax import lax
from jax.experimental import pallas as pl
from jax.experimental.pallas import tpu as pltpu


NEG_SLOPE = 0.01   # torch.nn.LeakyReLU default negative_slope
CHUNK = 512        # lanes per inner strip; (32, 512) f32 activations = 16 vregs


def _leaky_relu(x):
    # max(x, a*x) == LeakyReLU(x) for 0 < a <= 1 (cheaper than where()).
    return jnp.maximum(x, NEG_SLOPE * x)


def mlp_kernel(x_ref, w1_ref, b1_ref, w2_ref, b2_ref, w3_ref, b3_ref, o_ref):
    # Parameters: tiny, loaded once per grid step (blocks never change).
    w1 = w1_ref[...]            # (32, 2)   PyTorch-native Linear(2,32).weight
    b1 = b1_ref[...]            # (32, 1)
    w2 = w2_ref[...]            # (32, 32)
    b2 = b2_ref[...]            # (32, 1)
    w3 = w3_ref[...]            # (1, 32)
    b3 = b3_ref[0]              # scalar, SMEM

    bm = x_ref.shape[1]
    chunk = min(CHUNK, bm)
    n_strips = bm // chunk      # static: bm is a multiple of chunk by construction

    def compute(x):                                            # x: (2, chunk)
        # All three contractions on the MXU (f32 accumulate); VPU only does
        # the bias adds + LeakyReLU, EUP does tanh.
        h1 = _leaky_relu(jnp.dot(w1, x, preferred_element_type=jnp.float32) + b1)
        h2 = _leaky_relu(jnp.dot(w2, h1, preferred_element_type=jnp.float32) + b2)
        h3 = jnp.dot(w3, h2, preferred_element_type=jnp.float32) + b3
        return jnp.tanh(h3)                                    # (1, chunk)

    if n_strips == 1:
        o_ref[...] = compute(x_ref[...]).astype(o_ref.dtype)
    else:
        def strip(s, carry):
            start = pl.multiple_of(s * chunk, chunk)
            x = x_ref[:, pl.ds(start, chunk)]
            o_ref[:, pl.ds(start, chunk)] = compute(x).astype(o_ref.dtype)
            return carry

        lax.fori_loop(0, n_strips, strip, 0, unroll=min(n_strips, 4))


def _round_up(n, m):
    return ((n + m - 1) // m) * m


def _choose_bm(B, block_m):
    """Lane-tile (batch) size: multiple of 128, multiple of CHUNK when > CHUNK,
    shrunk for tiny batches, and aiming for >=2 grid steps (v7x megacore)."""
    r128 = _round_up(B, 128)
    if r128 <= CHUNK:
        # Tiny batch: one small tile, single strip; still honor a small block_m.
        return min(r128, _round_up(block_m, 128))
    target = _round_up(pl.cdiv(B, 2), CHUNK)           # >=2 grid steps if possible
    cap = _round_up(block_m, CHUNK)
    return max(CHUNK, min(cap, target))


def box_network_force_continuous_forward(x, params, *, block_m=16384):
    """x: (B, 2) float32.  Returns (B, 1) float32 — same as the PyTorch forward.

    Parameters are PyTorch-native shapes:
      w1 (32,2), b1 (32,), w2 (32,32), b2 (32,), w3 (1,32), b3 (1,)
    """
    w1, b1, w2, b2, w3, b3 = params
    B = x.shape[0]

    bm = _choose_bm(B, block_m)
    Bp = _round_up(B, bm)
    grid = (Bp // bm,)

    # Wrapper-side layout plumbing: feature-major, lane-dense presentation.
    x_fm = jnp.pad(x.T, ((0, 0), (0, Bp - B)))   # (2, Bp)
    b1c = b1.reshape(32, 1)
    b2c = b2.reshape(32, 1)
    b3s = b3.reshape(1)                          # SMEM scalar

    def const_spec(shape):
        return pl.BlockSpec(shape, lambda i: (0, 0))

    flops = 2 * Bp * (2 * 32 + 32 * 32 + 32 * 1)
    bytes_accessed = 4 * (Bp * 2 + Bp * 1 + 32 * 2 + 32 + 32 * 32 + 32 + 32 + 1)

    out = pl.pallas_call(
        mlp_kernel,
        out_shape=jax.ShapeDtypeStruct((1, Bp), jnp.float32),
        grid_spec=pltpu.PrefetchScalarGridSpec(
            num_scalar_prefetch=0,
            grid=grid,
            in_specs=[
                pl.BlockSpec((2, bm), lambda i: (0, i)),            # x tile
                const_spec((32, 2)),                                # W1
                const_spec((32, 1)),                                # b1
                const_spec((32, 32)),                               # W2
                const_spec((32, 1)),                                # b2
                const_spec((1, 32)),                                # W3
                pl.BlockSpec(memory_space=pltpu.MemorySpace.SMEM),  # b3 scalar
            ],
            out_specs=pl.BlockSpec((1, bm), lambda i: (0, i)),
        ),
        compiler_params=pltpu.CompilerParams(
            dimension_semantics=("parallel",),
        ),
        cost_estimate=pl.CostEstimate(
            flops=flops, transcendentals=Bp, bytes_accessed=bytes_accessed),
    )(x_fm, w1, b1c, w2, b2c, w3, b3s)

    return out[:, :B].T                          # (B, 1)


def init_params(key):
    """Deterministic init: uniform(-1/sqrt(fan_in), 1/sqrt(fan_in)) weights
    (PyTorch-native (out, in) layout), zero biases (as in the module __init__)."""
    k1, k2, k3 = jax.random.split(key, 3)

    def uinit(k, fan_in, shape):
        bound = 1.0 / math.sqrt(fan_in)
        return jax.random.uniform(k, shape, jnp.float32, -bound, bound)

    w1 = uinit(k1, 2, (32, 2))      # Linear(2, 32).weight
    b1 = jnp.zeros((32,), jnp.float32)
    w2 = uinit(k2, 32, (32, 32))    # Linear(32, 32).weight
    b2 = jnp.zeros((32,), jnp.float32)
    w3 = uinit(k3, 32, (1, 32))     # Linear(32, 1).weight
    b3 = jnp.zeros((1,), jnp.float32)
    return (w1, b1, w2, b2, w3, b3)


def reference_forward(x, params):
    w1, b1, w2, b2, w3, b3 = params
    h = _leaky_relu(x @ w1.T + b1)
    h = _leaky_relu(h @ w2.T + b2)
    return jnp.tanh(h @ w3.T + b3)


if __name__ == "__main__":
    key = jax.random.PRNGKey(0)
    k_params, k_x1, k_x2, k_x3 = jax.random.split(key, 4)
    params = init_params(k_params)

    # 1) Small batch consistent with the module's (B, 2) input: single tile.
    x_small = jax.random.normal(k_x1, (8, 2), jnp.float32)
    out_small = jax.block_until_ready(
        box_network_force_continuous_forward(x_small, params))
    ref_small = reference_forward(x_small, params)
    assert out_small.shape == (8, 1)
    assert jnp.allclose(out_small, ref_small, atol=1e-5, rtol=1e-4), \
        "small-batch mismatch vs pure-JAX reference"

    # 2) Non-multiple batch with a small forced tile: multi-step grid + padding.
    x_mid = jax.random.normal(k_x2, (333, 2), jnp.float32)
    out_mid = jax.block_until_ready(
        box_network_force_continuous_forward(x_mid, params, block_m=128))
    ref_mid = reference_forward(x_mid, params)
    assert out_mid.shape == (333, 1)
    assert jnp.allclose(out_mid, ref_mid, atol=1e-5, rtol=1e-4), \
        "padded multi-step-grid mismatch vs pure-JAX reference"

    # 3) Batch large enough to exercise the strip-mined fori_loop path
    #    (bm=1024 -> 2 strips of 512 lanes) and a 2-step parallel grid.
    x_big = jax.random.normal(k_x3, (1500, 2), jnp.float32)
    out_big = jax.block_until_ready(
        box_network_force_continuous_forward(x_big, params))
    ref_big = reference_forward(x_big, params)
    assert out_big.shape == (1500, 1)
    assert jnp.allclose(out_big, ref_big, atol=1e-5, rtol=1e-4), \
        "strip-mined-path mismatch vs pure-JAX reference"

    print("KERNEL_OK")
</pallas_src>

<mosaic_0001>
module attributes {stable_mosaic.version = 11 : i64} {
  func.func @mlp_kernel(%arg0: i32, %arg1: memref<2x128xf32, #tpu.memory_space<vmem>>, %arg2: memref<32x2xf32, #tpu.memory_space<vmem>>, %arg3: memref<32x1xf32, #tpu.memory_space<vmem>>, %arg4: memref<32x32xf32, #tpu.memory_space<vmem>>, %arg5: memref<32x1xf32, #tpu.memory_space<vmem>>, %arg6: memref<1x32xf32, #tpu.memory_space<vmem>>, %arg7: memref<1xf32, #tpu.memory_space<smem>>, %arg8: memref<1x128xf32, #tpu.memory_space<vmem>>) attributes {dimension_semantics = [#tpu.dimension_semantics<parallel>], iteration_bounds = array<i64: 1>, scalar_prefetch = 0 : i64, scratch_operands = 0 : i64, tpu.core_type = #tpu.core_type<tc>, window_params = [{transform_indices = @transform_0, window_bounds = array<i64: 2, 128>}, {pipeline_mode = #tpu.pipeline_mode<synchronous>, transform_indices = @transform_1, window_bounds = array<i64: 32, 2>}, {pipeline_mode = #tpu.pipeline_mode<synchronous>, transform_indices = @transform_2, window_bounds = array<i64: 32, 1>}, {pipeline_mode = #tpu.pipeline_mode<synchronous>, transform_indices = @transform_3, window_bounds = array<i64: 32, 32>}, {pipeline_mode = #tpu.pipeline_mode<synchronous>, transform_indices = @transform_4, window_bounds = array<i64: 32, 1>}, {pipeline_mode = #tpu.pipeline_mode<synchronous>, transform_indices = @transform_5, window_bounds = array<i64: 1, 32>}, {transform_indices = @transform_6, window_bounds = array<i64: 1>}, {transform_indices = @transform_7, window_bounds = array<i64: 1, 128>}]} {
    %c0 = arith.constant 0 : index
    %c0_0 = arith.constant 0 : index
    %0 = vector.load %arg2[%c0, %c0_0] : memref<32x2xf32, #tpu.memory_space<vmem>>, vector<32x2xf32>
    %c0_1 = arith.constant 0 : index
    %c0_2 = arith.constant 0 : index
    %1 = vector.load %arg3[%c0_1, %c0_2] : memref<32x1xf32, #tpu.memory_space<vmem>>, vector<32x1xf32>
    %c0_3 = arith.constant 0 : index
    %c0_4 = arith.constant 0 : index
    %2 = vector.load %arg4[%c0_3, %c0_4] : memref<32x32xf32, #tpu.memory_space<vmem>>, vector<32x32xf32>
    %c0_5 = arith.constant 0 : index
    %c0_6 = arith.constant 0 : index
    %3 = vector.load %arg5[%c0_5, %c0_6] : memref<32x1xf32, #tpu.memory_space<vmem>>, vector<32x1xf32>
    %c0_7 = arith.constant 0 : index
    %c0_8 = arith.constant 0 : index
    %4 = vector.load %arg6[%c0_7, %c0_8] : memref<1x32xf32, #tpu.memory_space<vmem>>, vector<1x32xf32>
    %c0_9 = arith.constant 0 : index
    %5 = memref.load %arg7[%c0_9] : memref<1xf32, #tpu.memory_space<smem>>
    %c0_10 = arith.constant 0 : index
    %c0_11 = arith.constant 0 : index
    %6 = vector.load %arg1[%c0_10, %c0_11] : memref<2x128xf32, #tpu.memory_space<vmem>>, vector<2x128xf32>
    %cst = arith.constant dense<0.000000e+00> : vector<32x128xf32>
    %7 = tpu.matmul %0, %6, %cst {dimension_numbers = #tpu.dot_dimension_numbers<[1], [0], [0], [1], [0, 0, 1, 1], [], []>} : vector<32x2xf32>, vector<2x128xf32>, vector<32x128xf32> -> vector<32x128xf32>
    %8 = vector.broadcast %1 : vector<32x1xf32> to vector<32x128xf32>
    %9 = arith.addf %7, %8 : vector<32x128xf32>
    %cst_12 = arith.constant 0.00999999977 : f32
    %10 = vector.broadcast %cst_12 : f32 to vector<32x128xf32>
    %11 = arith.mulf %10, %9 : vector<32x128xf32>
    %12 = arith.maximumf %9, %11 : vector<32x128xf32>
    %cst_13 = arith.constant dense<0.000000e+00> : vector<32x128xf32>
    %13 = tpu.matmul %2, %12, %cst_13 {dimension_numbers = #tpu.dot_dimension_numbers<[1], [0], [0], [1], [0, 0, 1, 1], [], []>} : vector<32x32xf32>, vector<32x128xf32>, vector<32x128xf32> -> vector<32x128xf32>
    %14 = vector.broadcast %3 : vector<32x1xf32> to vector<32x128xf32>
    %15 = arith.addf %13, %14 : vector<32x128xf32>
    %cst_14 = arith.constant 0.00999999977 : f32
    %16 = vector.broadcast %cst_14 : f32 to vector<32x128xf32>
    %17 = arith.mulf %16, %15 : vector<32x128xf32>
    %18 = arith.maximumf %15, %17 : vector<32x128xf32>
    %cst_15 = arith.constant dense<0.000000e+00> : vector<1x128xf32>
    %19 = tpu.matmul %4, %18, %cst_15 {dimension_numbers = #tpu.dot_dimension_numbers<[1], [0], [0], [1], [0, 0, 1, 1], [], []>} : vector<1x32xf32>, vector<32x128xf32>, vector<1x128xf32> -> vector<1x128xf32>
    %20 = vector.broadcast %5 : f32 to vector<1x128xf32>
    %21 = arith.addf %19, %20 : vector<1x128xf32>
    %22 = math.tanh %21 : vector<1x128xf32>
    %c0_16 = arith.constant 0 : index
    %c0_17 = arith.constant 0 : index
    %23 = vector.load %arg8[%c0_16, %c0_17] : memref<1x128xf32, #tpu.memory_space<vmem>>, vector<1x128xf32>
    tpu.vector_store %arg8[%c0_16, %c0_17], %22 {strides = array<i32>} : memref<1x128xf32, #tpu.memory_space<vmem>>, vector<1x128xf32>,
    return
  }
  func.func @transform_0(%arg0: i32) -> (i32, i32) {
    %c0_i32 = arith.constant 0 : i32
    %c0_i32_0 = arith.constant 0 : i32
    return %c0_i32, %arg0 : i32, i32
  }
  func.func @transform_1(%arg0: i32) -> (i32, i32) {
    %c0_i32 = arith.constant 0 : i32
    %c0_i32_0 = arith.constant 0 : i32
    %c0_i32_1 = arith.constant 0 : i32
    return %c0_i32, %c0_i32_0 : i32, i32
  }
  func.func @transform_2(%arg0: i32) -> (i32, i32) {
    %c0_i32 = arith.constant 0 : i32
    %c0_i32_0 = arith.constant 0 : i32
    %c0_i32_1 = arith.constant 0 : i32
    return %c0_i32, %c0_i32_0 : i32, i32
  }
  func.func @transform_3(%arg0: i32) -> (i32, i32) {
    %c0_i32 = arith.constant 0 : i32
    %c0_i32_0 = arith.constant 0 : i32
    %c0_i32_1 = arith.constant 0 : i32
    return %c0_i32, %c0_i32_0 : i32, i32
  }
  func.func @transform_4(%arg0: i32) -> (i32, i32) {
    %c0_i32 = arith.constant 0 : i32
    %c0_i32_0 = arith.constant 0 : i32
    %c0_i32_1 = arith.constant 0 : i32
    return %c0_i32, %c0_i32_0 : i32, i32
  }
  func.func @transform_5(%arg0: i32) -> (i32, i32) {
    %c0_i32 = arith.constant 0 : i32
    %c0_i32_0 = arith.constant 0 : i32
    %c0_i32_1 = arith.constant 0 : i32
    return %c0_i32, %c0_i32_0 : i32, i32
  }
  func.func @transform_6(%arg0: i32) -> i32 {
    %c0_i32 = arith.constant 0 : i32
    %c0_i32_0 = arith.constant 0 : i32
    return %c0_i32 : i32
  }
  func.func @transform_7(%arg0: i32) -> (i32, i32) {
    %c0_i32 = arith.constant 0 : i32
    %c0_i32_0 = arith.constant 0 : i32
    return %c0_i32, %arg0 : i32, i32
  }
}

</mosaic_0001>

<bundles_post_ra>
// kernel: tpu_custom_call.1
= control target key start
LH: loop header
LB: loop body
LE: loop exit
PB: predicated region body
PF: predicated region fallthrough
CT: control target
= control target key end

     0   :  { %vm80_vm0 = vcmask 1041408   ;;  %vm67_vm1 = vcmask 15360   ;;  %v501_v5 = vmov 0   ;;  %s624_s0 = inlined_call_operand.vmem [shape: f32[2,128], index: 0, kind: input, shape index: {}]   ;;  %s625_s1 = inlined_call_operand.vmem [shape: f32[32,2], index: 1, kind: input, shape index: {}]   ;;  %s626_s2 = inlined_call_operand.vmem [shape: f32[32,1], index: 2, kind: input, shape index: {}]   ;;  %s627_s3 = inlined_call_operand.vmem [shape: f32[32,32], index: 3, kind: input, shape index: {}]   ;;  %s628_s4 = inlined_call_operand.vmem [shape: f32[32,1], index: 4, kind: input, shape index: {}]   ;;  %s629_s5 = inlined_call_operand.vmem [shape: f32[1,32], index: 5, kind: input, shape index: {}]   ;;  %s630_s6 = inlined_call_operand.<no memory space> [shape: f32[1], index: 6, kind: input, shape index: {}]   ;;  %s631_s7 = inlined_call_operand.hbm [shape: f32[1,128], index: 7, kind: output, shape index: {}]  }
   0x1   :  { %v46_v0 = vld [vmem:[%s624_s0] sm:$0x3]  ;;  %v29_v2 = vld [vmem:[%s625_s1 + $0x8] sm:$0xff]  ;;  %v30_v3 = vld [vmem:[%s625_s1 + $0x10] sm:$0xff]  ;;  %473 = vset.pattern.permute.xlu0 %v501_v5  ;;  %474 = vset.pattern.permute.xlu1 %v501_v5 }
   0x2   :  { %v28_v1 = vld [vmem:[%s625_s1] sm:$0xff]  ;;  %421 = vmatprep.subr.msk.mxu0 %vm80_vm0, %v46_v0  ;;  %v34_v6 = vld [vmem:[%s626_s2 + $0x10] sm:$0xff]  ;;  %v31_v7 = vld [vmem:[%s625_s1 + $0x18] sm:$0xff] }
   0x3   :  { %423 = vmatprep.mubr.msk.f32.mxu0 %vm67_vm1, %v28_v1  ;;  %v32_v4 = vld [vmem:[%s626_s2] sm:$0xff]  ;;  %422 = vmatpush3.msk.msra.mxu0 %vm80_vm0, %v46_v0  ;;  %v33_v8 = vld [vmem:[%s626_s2 + $0x8] sm:$0xff] }
   0x4   :  { %424 = vmatmul.mubr.msk.f32.vlgmr.msra.gmra.mrb[0].mxu0 %vm67_vm1, %v29_v2  ;;  %49 = vperm.xlu0 %473, %v32_v4  }
   0x5   :  { %426 = vmatprep.mubr.msk.f32.mxu0 %vm67_vm1, %v30_v3 }
   0x6   :  { %13 = vsyncpa [#allocation4], 0  ;;  %59 = vperm.xlu1 %474, %v34_v6   ;;  %v35_v9 = vld [vmem:[%s626_s2 + $0x18] sm:$0xff]  ;;  %v40_v10 = vld [vmem:[%s628_s4] sm:$0xff]  ;;  %vm197_vm2 = vcmask 261120   ;;  %v502_v40 = vmov 0.0|0.0   ;;  %v303_v1 = vstv %s630_s6 }
   0x7   :  { %v41_v11 = vld [vmem:[%s628_s4 + $0x8] sm:$0xff]  ;;  %v42_v12 = vld [vmem:[%s628_s4 + $0x10] sm:$0xff]  ;;  %v43_v13 = vld [vmem:[%s628_s4 + $0x18] sm:$0xff]  ;;  %462 = vmatprep.subr.bf16.mxu0 %v502_v40  ;;  %vm503_vm3 = vmmov 0   ;;  %v504_v41 = vmov 0.0   ;;  %s505_s0 = smov [#allocation3]  }
   0x8   :  { %427 = vmatmul.mubr.msk.f32.gmra.mrb[2].mxu0 %vm67_vm1, %v31_v7  ;;  %54 = vperm.xlu0 %473, %v33_v8   ;;  %v36_v14 = vld [vmem:[%s627_s3] sm:$0xff]  ;;  %v37_v37 = vld [vmem:[%s627_s3 + $0x8] sm:$0xff]  ;;  %v38_v38 = vld [vmem:[%s627_s3 + $0x10] sm:$0xff]  ;;  %s385_s11 = sshll.u32 %s505_s0, 4  ;;  %s386_s11 = int_to_ptr.vmem [resolvable:$true] %s385_s11 }
   0x9   :  { %437 = vmatprep.mubr.msk.f32.mxu1 %vm197_vm2, %v36_v14  ;;  %v39_v39 = vld [vmem:[%s627_s3 + $0x18] sm:$0xff]  ;;  %451 = vmatprep.mubr.msk.f32.mxu0 %vm503_vm3, %v504_v41  ;;  %v44_v0 = vld [vmem:[%s629_s5] sm:$0x1]  ;;  %s477_s12 = scalar_lea.vmem %s386_s11, 16  ;;  %s481_s13 = scalar_lea.vmem %s386_s11, 32 }
   0xa   :  { %64 = vperm.xlu1 %474, %v35_v9   ;;  %p478_p0 = scmp.ne.s32.totalorder %s386_s11, %s477_s12  ;;  %p482_p1 = scmp.lt.s32.totalorder %s386_s11, %s386_s11 }
   0xb   :  { %p483_p2 = scmp.lt.s32.totalorder %s481_s13, %s477_s12 }
   0xc   :  { %179 = vperm.xlu0 %473, %v40_v10  }
   0xd   :  { %p484_p3 = por %p483_p2, %p482_p1 }
   0xe   :  { %184 = vperm.xlu1 %474, %v41_v11  }
   0xf   :  { %p485_p4 = pnand %p484_p3, %p478_p0 }
  0x10   :  { %189 = vperm.xlu0 %473, %v42_v12  }
  0x12   :  { %194 = vperm.xlu1 %474, %v43_v13  }
  0x83   :  { %v50_v15 = vpop.permute.xlu0 %49 }
  0x85   :  { %v60_v16 = vpop.permute.xlu1 %59 }
  0x87   :  { %v55_v17 = vpop.permute.xlu0 %54 }
  0x89   :  { %v65_v23 = vpop.permute.xlu1 %64 }
  0x8b   :  { %v180_v43 = vpop.permute.xlu0 %179 }
  0x8d   :  { %v185_v42 = vpop.permute.xlu1 %184 }
  0x8f   :  { %v190_v52 = vpop.permute.xlu0 %189 }
  0x91   :  { %v195_v49 = vpop.permute.xlu1 %194 }
  0xd7   :  { %v425_v18 = vpop.f32.mrb[0].mxu0 }
  0xd8   :  { %v156_v19 = vadd.f32 %v425_v18, %v55_v17  ;;  %v150_v20 = vpop.f32.mrb[1].mxu0 }
  0xd9   :  { %v151_v21 = vadd.f32 %v150_v20, %v50_v15 }
  0xda   :  { %v170_v22 = vmul.f32 0.01, %v156_v19 }
  0xdb   :  { %v169_v24 = vmul.f32 0.01, %v151_v21  ;;  %v428_v25 = vpop.f32.mrb[2].mxu0 }
  0xdc   :  { %v174_v26 = vmax.f32 %v156_v19, %v170_v22  ;;  %v166_v27 = vadd.f32 %v428_v25, %v65_v23  ;;  %v160_v28 = vpop.f32.mrb[3].mxu0 }
  0xdd   :  { %v173_v29 = vmax.f32 %v151_v21, %v169_v24  ;;  %v161_v30 = vadd.f32 %v160_v28, %v60_v16 }
  0xde   :  { %v172_v31 = vmul.f32 0.01, %v166_v27 }
  0xdf   :  { %v171_v32 = vmul.f32 0.01, %v161_v30  ;;  %v454_v33 = vpack.c.bf16 %v174_v26, %v173_v29 }
  0xe0   :  { %v176_v34 = vmax.f32 %v166_v27, %v172_v31 }
  0xe1   :  { %v175_v35 = vmax.f32 %v161_v30, %v171_v32  ;;  %455 = vmatprep.subr.bf16.mxu1 %v454_v33 }
  0xe2   :  { %457 = vmatpush3.bf16.msra.mxu1 %v454_v33 }
  0xe3   :  { %v458_v36 = vpack.c.bf16 %v176_v34, %v175_v35 }
  0xe5   :  { %459 = vmatprep.subr.bf16.mxu1 %v458_v36 }
  0xe6   :  { %461 = vmatpush3.bf16.msra.mxu1 %v458_v36 }
  0xe9   :  { %438 = vmatmul.mubr.msk.f32.vlgmr.msra.gmra.mrb[0].mxu1 %vm197_vm2, %v37_v37 }
  0xea   :  { %440 = vmatprep.mubr.msk.f32.mxu1 %vm197_vm2, %v38_v38 }
  0xed   :  { %441 = vmatmul.mubr.msk.f32.gmra.mrb[2].mxu1 %vm197_vm2, %v39_v39 }
 0x1bc   :  { %v439_v44 = vpop.f32.mrb[0].mxu1 }
 0x1bd   :  { %v282_v45 = vadd.f32 %v439_v44, %v185_v42  ;;  %v276_v46 = vpop.f32.mrb[1].mxu1 }
 0x1be   :  { %v277_v47 = vadd.f32 %v276_v46, %v180_v43 }
 0x1bf   :  { %v296_v48 = vmul.f32 0.01, %v282_v45 }
 0x1c0   :  { %v295_v50 = vmul.f32 0.01, %v277_v47  ;;  %v442_v51 = vpop.f32.mrb[2].mxu1 }
 0x1c1   :  { %v300_v53 = vmax.f32 %v282_v45, %v296_v48  ;;  %v292_v54 = vadd.f32 %v442_v51, %v195_v49  ;;  %v286_v55 = vpop.f32.mrb[3].mxu1 }
 0x1c2   :  { %v299_v56 = vmax.f32 %v277_v47, %v295_v50  ;;  %v287_v57 = vadd.f32 %v286_v55, %v190_v52 }
 0x1c3   :  { %v298_v58 = vmul.f32 0.01, %v292_v54 }
 0x1c4   :  { %v463_v59 = vpack.c.bf16 %v300_v53, %v299_v56  ;;  %v297_v60 = vmul.f32 0.01, %v287_v57 }
 0x1c5   :  { %v302_v61 = vmax.f32 %v292_v54, %v298_v58 }
 0x1c6   :  { %v301_v62 = vmax.f32 %v287_v57, %v297_v60  ;;  %464 = vmatpush3.bf16.msra.mxu0 %v463_v59 }
 0x1c7   :  { %465 = vmatprep.subr.bf16.mxu0 %v502_v40 }
 0x1c8   :  { %v466_v63 = vpack.c.bf16 %v302_v61, %v301_v62 }
 0x1ca   :  { %467 = vmatpush3.bf16.msra.mxu0 %v466_v63 }
 0x1cd   :  { %452 = vmatmul.mubr.msk.f32.vlgmr.msra.gmra.mrb[4].mxu0 %vm197_vm2, %v44_v0 }
 0x2a0   :  { %v373_v2 = vpop.f32.mrb[4].mxu0 }
 0x2a1   :  { %v374_v3 = vadd.f32 %v373_v2, %v303_v1  ;;  %v453_v4 = vpop.f32.mrb[5].mxu0 }
 0x2a3   :  { %475 = vtanh.f32 %v374_v3 }
 0x2ad   :  { %v476_v5 = vpop.eup %475 }
 0x2ae   :  { %378 = vst [vmem:[#allocation3] sm:$0x1] %v476_v5 }
 0x2af   :  { %488 = shalt.err (!%p485_p4)
}
 0x2b0   :  { %s489_s6 = scalar_lea.hbm %s631_s7, 16 }
 0x2b1   :  { %p490_p5 = scmp.ne.s32.totalorder %s631_s7, %s489_s6  ;;  %p493_p6 = scmp.lt.u32.totalorder %s489_s6, %s631_s7 }
 0x2b3   :  { %p495_p7 = pnand %p493_p6, %p490_p5 }
 0x2b5   :  { %498 = shalt.err (!%p495_p7)
}
 0x2b6   :  { %388 = dma.vmem_to_hbm [thread:$0]  %s386_s11, 16, %s631_s7, [#allocation4]  }
 0x2b7   :  { %499 = dma.done.wait [#allocation4], 16  }
 0x2b8   :  { %500 = vsyncadd [#allocation4], 4294967280 }
 0x2b9   :  { %392 = vsyncpa [#allocation4], 1 }

</bundles_post_ra>
